<compile_context>
chip_gen: v5e
topology: v5e:2x2
jax: 0.10.0
libtpu: 0.0.40
codegen_flags: <defaults>
</compile_context>

<pallas_src>
import jax
import jax.numpy as jnp
from jax.experimental import pallas as pl
from jax.experimental.pallas import tpu as pltpu


_SUBLANE = 8
# Working-set target for tile sizing: leaves headroom on v7x (64 MiB physical).
_VMEM_BUDGET_BYTES = 24 * 1024 * 1024
# Explicit scoped-VMEM limit (safe on v5e/v6e: 128 MiB phys; v7x: 64 MiB phys).
_VMEM_LIMIT_BYTES = 48 * 1024 * 1024


def _round_up(x, m):
    return ((x + m - 1) // m) * m


def _vmem_bytes(tile_m, layer_dims, x_itemsize):
    """Rough VMEM working-set estimate for one grid step (double-buffered)."""
    e_in = layer_dims[0][0]
    e_out = layer_dims[-1][1]
    total = 2 * tile_m * e_in * x_itemsize        # x tile, double buffered
    total += 2 * tile_m * e_out * x_itemsize      # out tile, double buffered
    for din, dout in layer_dims:                  # resident weights / biases
        total += 2 * (din * dout * 2 + dout * 4)  # bf16 W, f32 b (x2 buffers)
    widths = [e_in] + [dout for _, dout in layer_dims]
    total += tile_m * sum(widths) * 4             # f32 intermediates / residual
    return total


def _fit_tile_m(n_rows, layer_dims, x_itemsize, tile_m):
    """Multiple-of-8 row tile, shrunk until the working set fits the budget."""
    tile = min(tile_m, _round_up(n_rows, _SUBLANE))
    tile = max(_SUBLANE, _round_up(tile, _SUBLANE))
    while tile > _SUBLANE and _vmem_bytes(tile, layer_dims, x_itemsize) > _VMEM_BUDGET_BYTES:
        tile = max(_SUBLANE, _round_up(tile // 2, _SUBLANE))
    return tile


# ------------------------------ kernels -------------------------------------


def _resmlp_mlp1_kernel(x_ref, w1_ref, b1_ref, w2_ref, b2_ref, o_ref):
    # out = relu(x @ W1 + b1) @ W2 + b2 + x     (one [TILE_M, E] row tile)
    x_f32 = x_ref[...].astype(jnp.float32)          # kept for the residual
    x_mxu = x_ref[...].astype(w1_ref.dtype)         # bf16 operand for the MXU
    h = jnp.dot(x_mxu, w1_ref[...], preferred_element_type=jnp.float32)
    h = jnp.maximum(h + b1_ref[...], 0.0)
    y = jnp.dot(h.astype(w2_ref.dtype), w2_ref[...],
                preferred_element_type=jnp.float32) + b2_ref[...]
    o_ref[...] = (y + x_f32).astype(o_ref.dtype)


def _resmlp_mlp2_kernel(x_ref, w1_ref, b1_ref, w2_ref, b2_ref, w3_ref, b3_ref,
                        o_ref):
    # out = relu(relu(x @ W1 + b1) @ W2 + b2) @ W3 + b3 + x
    x_f32 = x_ref[...].astype(jnp.float32)
    x_mxu = x_ref[...].astype(w1_ref.dtype)
    h = jnp.dot(x_mxu, w1_ref[...], preferred_element_type=jnp.float32)
    h = jnp.maximum(h + b1_ref[...], 0.0)
    h = jnp.dot(h.astype(w2_ref.dtype), w2_ref[...],
                preferred_element_type=jnp.float32)
    h = jnp.maximum(h + b2_ref[...], 0.0)
    y = jnp.dot(h.astype(w3_ref.dtype), w3_ref[...],
                preferred_element_type=jnp.float32) + b3_ref[...]
    o_ref[...] = (y + x_f32).astype(o_ref.dtype)


# --------------------------- param preparation -------------------------------
# PyTorch stores nn.Linear weights as [out, in] and computes x @ W^T.
# Prepare ONCE: weights -> [in, out] in the MXU dtype, biases -> [1, out] f32.


def prepare_mlp1_params(torch_params, mxu_dtype=jnp.bfloat16):
    return {
        "w1": torch_params["w1"].T.astype(mxu_dtype),
        "b1": torch_params["b1"].reshape(1, -1).astype(jnp.float32),
        "w2": torch_params["w2"].T.astype(mxu_dtype),
        "b2": torch_params["b2"].reshape(1, -1).astype(jnp.float32),
    }


def prepare_mlp2_params(torch_params, mxu_dtype=jnp.bfloat16):
    return {
        "w1": torch_params["w1"].T.astype(mxu_dtype),
        "b1": torch_params["b1"].reshape(1, -1).astype(jnp.float32),
        "w2": torch_params["w2"].T.astype(mxu_dtype),
        "b2": torch_params["b2"].reshape(1, -1).astype(jnp.float32),
        "w3": torch_params["w3"].T.astype(mxu_dtype),
        "b3": torch_params["b3"].reshape(1, -1).astype(jnp.float32),
    }


# ------------------------------ wrappers ------------------------------------


def _resident_spec(shape):
    # Small weight/bias blocks: full extent, same block at every grid step.
    return pl.BlockSpec(shape, lambda i: (0, 0))


def resmlp_mlp1(x, params, *, residual=True, tile_m=512):
    """x: [batch, seq, embed]. params: output of prepare_mlp1_params."""
    assert residual, "residual=False just drops the final '+ x' in the kernel"
    B, S, E = x.shape
    N = B * S
    x2 = x.reshape(N, E)
    w1, b1, w2, b2 = params["w1"], params["b1"], params["w2"], params["b2"]
    H = w1.shape[1]
    assert w1.shape == (E, H) and w2.shape == (H, E)

    layer_dims = [(E, H), (H, E)]
    tm = _fit_tile_m(N, layer_dims, x2.dtype.itemsize, tile_m)
    grid = (pl.cdiv(N, tm),)

    flops = 2 * N * E * H + 2 * N * H * E
    bytes_accessed = (2 * N * E * x2.dtype.itemsize            # x in + out
                      + w1.size * w1.dtype.itemsize + w2.size * w2.dtype.itemsize
                      + b1.size * 4 + b2.size * 4)

    out = pl.pallas_call(
        _resmlp_mlp1_kernel,
        out_shape=jax.ShapeDtypeStruct((N, E), x.dtype),
        grid=grid,
        in_specs=[
            pl.BlockSpec((tm, E), lambda i: (i, 0)),   # row tile of x
            _resident_spec((E, H)),
            _resident_spec((1, H)),
            _resident_spec((H, E)),
            _resident_spec((1, E)),
        ],
        out_specs=pl.BlockSpec((tm, E), lambda i: (i, 0)),
        compiler_params=pltpu.CompilerParams(
            dimension_semantics=("parallel",),
            vmem_limit_bytes=_VMEM_LIMIT_BYTES),
        cost_estimate=pl.CostEstimate(flops=flops, transcendentals=0,
                                      bytes_accessed=bytes_accessed),
    )(x2, w1, b1, w2, b2)
    return out.reshape(B, S, E)


def resmlp_mlp2(x, params, *, residual=True, tile_m=512):
    assert residual
    B, S, E = x.shape
    N = B * S
    x2 = x.reshape(N, E)
    w1, b1 = params["w1"], params["b1"]
    w2, b2 = params["w2"], params["b2"]
    w3, b3 = params["w3"], params["b3"]
    H = w1.shape[1]
    H2 = w2.shape[1]
    assert w1.shape == (E, H) and w2.shape == (H, H2) and w3.shape == (H2, E)

    layer_dims = [(E, H), (H, H2), (H2, E)]
    tm = _fit_tile_m(N, layer_dims, x2.dtype.itemsize, tile_m)
    grid = (pl.cdiv(N, tm),)

    flops = 2 * N * E * H + 2 * N * H * H2 + 2 * N * H2 * E
    bytes_accessed = (2 * N * E * x2.dtype.itemsize
                      + sum(w.size * w.dtype.itemsize for w in (w1, w2, w3))
                      + sum(b.size * 4 for b in (b1, b2, b3)))

    out = pl.pallas_call(
        _resmlp_mlp2_kernel,
        out_shape=jax.ShapeDtypeStruct((N, E), x.dtype),
        grid=grid,
        in_specs=[
            pl.BlockSpec((tm, E), lambda i: (i, 0)),   # row tile of x
            _resident_spec((E, H)),
            _resident_spec((1, H)),
            _resident_spec((H, H2)),
            _resident_spec((1, H2)),
            _resident_spec((H2, E)),
            _resident_spec((1, E)),
        ],
        out_specs=pl.BlockSpec((tm, E), lambda i: (i, 0)),
        compiler_params=pltpu.CompilerParams(
            dimension_semantics=("parallel",),
            vmem_limit_bytes=_VMEM_LIMIT_BYTES),
        cost_estimate=pl.CostEstimate(flops=flops, transcendentals=0,
                                      bytes_accessed=bytes_accessed),
    )(x2, w1, b1, w2, b2, w3, b3)
    return out.reshape(B, S, E)


# ------------------------- deterministic params ------------------------------


def init_linear(key, out_dim, in_dim, dtype=jnp.float32):
    """Deterministic stand-in for nn.Linear init (uniform +/- 1/sqrt(in))."""
    kw, kb = jax.random.split(key)
    bound = 1.0 / jnp.sqrt(float(in_dim))
    w = jax.random.uniform(kw, (out_dim, in_dim), dtype, -bound, bound)
    b = jax.random.uniform(kb, (out_dim,), dtype, -bound, bound)
    return w, b


def init_mlp1_params(key, embed_dim, hidden_dim):
    k1, k2 = jax.random.split(key)
    w1, b1 = init_linear(k1, hidden_dim, embed_dim)
    w2, b2 = init_linear(k2, embed_dim, hidden_dim)
    return {"w1": w1, "b1": b1, "w2": w2, "b2": b2}


def init_mlp2_params(key, embed_dim, hidden_dim):
    k1, k2, k3 = jax.random.split(key, 3)
    w1, b1 = init_linear(k1, hidden_dim, embed_dim)
    w2, b2 = init_linear(k2, hidden_dim // 2, hidden_dim)
    w3, b3 = init_linear(k3, embed_dim, hidden_dim // 2)
    return {"w1": w1, "b1": b1, "w2": w2, "b2": b2, "w3": w3, "b3": b3}


# ------------------------------ reference ------------------------------------


def ref_mlp1(x, p):
    h = jnp.maximum(x @ p["w1"].T + p["b1"], 0.0)
    return h @ p["w2"].T + p["b2"] + x


def ref_mlp2(x, p):
    h = jnp.maximum(x @ p["w1"].T + p["b1"], 0.0)
    h = jnp.maximum(h @ p["w2"].T + p["b2"], 0.0)
    return h @ p["w3"].T + p["b3"] + x


# --------------------------------- main --------------------------------------

if __name__ == "__main__":
    key = jax.random.PRNGKey(0)
    kx, kp1, kp2 = jax.random.split(key, 3)

    batch, seq, embed_dim, hidden_dim = 2, 8, 32, 64
    x = jax.random.normal(kx, (batch, seq, embed_dim), jnp.float32)

    p1_torch = init_mlp1_params(kp1, embed_dim, hidden_dim)
    p2_torch = init_mlp2_params(kp2, embed_dim, hidden_dim)

    # Prepare (transpose + cast) ONCE, outside the forward path.
    p1 = prepare_mlp1_params(p1_torch)
    p2 = prepare_mlp2_params(p2_torch)

    # tile_m=8 only to exercise a multi-step (grid > 1) pipeline at this tiny
    # N = 16; production sizes should use the default tile_m=512.
    y1 = jax.block_until_ready(resmlp_mlp1(x, p1, tile_m=8))
    y2 = jax.block_until_ready(resmlp_mlp2(x, p2, tile_m=8))

    r1 = ref_mlp1(x, p1_torch)
    r2 = ref_mlp2(x, p2_torch)

    assert y1.shape == x.shape and y2.shape == x.shape
    # bf16 MXU operands with f32 accumulation -> loosened tolerance vs f32 ref.
    assert jnp.allclose(y1, r1, atol=5e-2, rtol=5e-2), "mlp1 mismatch"
    assert jnp.allclose(y2, r2, atol=5e-2, rtol=5e-2), "mlp2 mismatch"

    print("KERNEL_OK")
</pallas_src>

<mosaic_0001>
module attributes {stable_mosaic.version = 11 : i64} {
  func.func @_resmlp_mlp1_kernel(%arg0: i32, %arg1: memref<8x32xf32, #tpu.memory_space<vmem>>, %arg2: memref<32x64xbf16, #tpu.memory_space<vmem>>, %arg3: memref<1x64xf32, #tpu.memory_space<vmem>>, %arg4: memref<64x32xbf16, #tpu.memory_space<vmem>>, %arg5: memref<1x32xf32, #tpu.memory_space<vmem>>, %arg6: memref<8x32xf32, #tpu.memory_space<vmem>>) attributes {dimension_semantics = [#tpu.dimension_semantics<parallel>], iteration_bounds = array<i64: 2>, scalar_prefetch = 0 : i64, scratch_operands = 0 : i64, tpu.core_type = #tpu.core_type<tc>, window_params = [{transform_indices = @transform_0, window_bounds = array<i64: 8, 32>}, {pipeline_mode = #tpu.pipeline_mode<synchronous>, transform_indices = @transform_1, window_bounds = array<i64: 32, 64>}, {pipeline_mode = #tpu.pipeline_mode<synchronous>, transform_indices = @transform_2, window_bounds = array<i64: 1, 64>}, {pipeline_mode = #tpu.pipeline_mode<synchronous>, transform_indices = @transform_3, window_bounds = array<i64: 64, 32>}, {pipeline_mode = #tpu.pipeline_mode<synchronous>, transform_indices = @transform_4, window_bounds = array<i64: 1, 32>}, {transform_indices = @transform_5, window_bounds = array<i64: 8, 32>}]} {
    %c0 = arith.constant 0 : index
    %c0_0 = arith.constant 0 : index
    %0 = vector.load %arg1[%c0, %c0_0] : memref<8x32xf32, #tpu.memory_space<vmem>>, vector<8x32xf32>
    %c0_1 = arith.constant 0 : index
    %c0_2 = arith.constant 0 : index
    %1 = vector.load %arg1[%c0_1, %c0_2] : memref<8x32xf32, #tpu.memory_space<vmem>>, vector<8x32xf32>
    %2 = arith.truncf %1 : vector<8x32xf32> to vector<8x32xbf16>
    %c0_3 = arith.constant 0 : index
    %c0_4 = arith.constant 0 : index
    %3 = vector.load %arg2[%c0_3, %c0_4] : memref<32x64xbf16, #tpu.memory_space<vmem>>, vector<32x64xbf16>
    %cst = arith.constant dense<0.000000e+00> : vector<8x64xf32>
    %4 = tpu.matmul %2, %3, %cst {dimension_numbers = #tpu.dot_dimension_numbers<[1], [0], [0], [1], [0, 0, 1, 1], [], []>} : vector<8x32xbf16>, vector<32x64xbf16>, vector<8x64xf32> -> vector<8x64xf32>
    %c0_5 = arith.constant 0 : index
    %c0_6 = arith.constant 0 : index
    %5 = vector.load %arg3[%c0_5, %c0_6] : memref<1x64xf32, #tpu.memory_space<vmem>>, vector<1x64xf32>
    %6 = vector.broadcast %5 : vector<1x64xf32> to vector<8x64xf32>
    %7 = arith.addf %4, %6 : vector<8x64xf32>
    %cst_7 = arith.constant 0.000000e+00 : f32
    %8 = vector.broadcast %cst_7 : f32 to vector<8x64xf32>
    %9 = arith.maximumf %7, %8 : vector<8x64xf32>
    %10 = arith.truncf %9 : vector<8x64xf32> to vector<8x64xbf16>
    %c0_8 = arith.constant 0 : index
    %c0_9 = arith.constant 0 : index
    %11 = vector.load %arg4[%c0_8, %c0_9] : memref<64x32xbf16, #tpu.memory_space<vmem>>, vector<64x32xbf16>
    %cst_10 = arith.constant dense<0.000000e+00> : vector<8x32xf32>
    %12 = tpu.matmul %10, %11, %cst_10 {dimension_numbers = #tpu.dot_dimension_numbers<[1], [0], [0], [1], [0, 0, 1, 1], [], []>} : vector<8x64xbf16>, vector<64x32xbf16>, vector<8x32xf32> -> vector<8x32xf32>
    %c0_11 = arith.constant 0 : index
    %c0_12 = arith.constant 0 : index
    %13 = vector.load %arg5[%c0_11, %c0_12] : memref<1x32xf32, #tpu.memory_space<vmem>>, vector<1x32xf32>
    %14 = vector.broadcast %13 : vector<1x32xf32> to vector<8x32xf32>
    %15 = arith.addf %12, %14 : vector<8x32xf32>
    %16 = arith.addf %15, %0 : vector<8x32xf32>
    %c0_13 = arith.constant 0 : index
    %c0_14 = arith.constant 0 : index
    %17 = vector.load %arg6[%c0_13, %c0_14] : memref<8x32xf32, #tpu.memory_space<vmem>>, vector<8x32xf32>
    tpu.vector_store %arg6[%c0_13, %c0_14], %16 {strides = array<i32>} : memref<8x32xf32, #tpu.memory_space<vmem>>, vector<8x32xf32>,
    return
  }
  func.func @transform_0(%arg0: i32) -> (i32, i32) {
    %c0_i32 = arith.constant 0 : i32
    %c0_i32_0 = arith.constant 0 : i32
    return %arg0, %c0_i32 : i32, i32
  }
  func.func @transform_1(%arg0: i32) -> (i32, i32) {
    %c0_i32 = arith.constant 0 : i32
    %c0_i32_0 = arith.constant 0 : i32
    %c0_i32_1 = arith.constant 0 : i32
    return %c0_i32, %c0_i32_0 : i32, i32
  }
  func.func @transform_2(%arg0: i32) -> (i32, i32) {
    %c0_i32 = arith.constant 0 : i32
    %c0_i32_0 = arith.constant 0 : i32
    %c0_i32_1 = arith.constant 0 : i32
    return %c0_i32, %c0_i32_0 : i32, i32
  }
  func.func @transform_3(%arg0: i32) -> (i32, i32) {
    %c0_i32 = arith.constant 0 : i32
    %c0_i32_0 = arith.constant 0 : i32
    %c0_i32_1 = arith.constant 0 : i32
    return %c0_i32, %c0_i32_0 : i32, i32
  }
  func.func @transform_4(%arg0: i32) -> (i32, i32) {
    %c0_i32 = arith.constant 0 : i32
    %c0_i32_0 = arith.constant 0 : i32
    %c0_i32_1 = arith.constant 0 : i32
    return %c0_i32, %c0_i32_0 : i32, i32
  }
  func.func @transform_5(%arg0: i32) -> (i32, i32) {
    %c0_i32 = arith.constant 0 : i32
    %c0_i32_0 = arith.constant 0 : i32
    return %arg0, %c0_i32 : i32, i32
  }
}

</mosaic_0001>

<bundles_post_ra>
// kernel: tpu_custom_call.1
= control target key start
LH: loop header
LB: loop body
LE: loop exit
PB: predicated region body
PF: predicated region fallthrough
CT: control target
= control target key end

     0   :  { %10 = vsyncpa [#allocation3], 0  ;;  %s680_s0 = inlined_call_operand.vmem [shape: f32[16,32], index: 0, kind: input, shape index: {}]   ;;  %s681_s1 = inlined_call_operand.vmem [shape: bf16[32,64], index: 1, kind: input, shape index: {}]   ;;  %s682_s2 = inlined_call_operand.vmem [shape: f32[1,64], index: 2, kind: input, shape index: {}]   ;;  %s683_s3 = inlined_call_operand.vmem [shape: bf16[64,32], index: 3, kind: input, shape index: {}]   ;;  %s684_s4 = inlined_call_operand.vmem [shape: f32[1,32], index: 4, kind: input, shape index: {}]   ;;  %s685_s5 = inlined_call_operand.hbm [shape: f32[16,32], index: 5, kind: output, shape index: {}]  }
   0x1   :  { %12 = vsyncpa [#allocation3 + $0x1], 0  ;;  %s569_s18 = smov 0   ;;  %s571_s19 = smov 0  }
   0x2   :  { %s573_s20 = smov 0   ;;  %s575_s21 = smov 0  }
   0x3 LB: > { %s590_s22 = sadd.s32 4294967295, %s537_s21   ;;  %s392_s23 = sadd.s32 4294967294, %s537_s21   ;;  %s537_s21 = sphi %s575_s21, %s691_s21   ;;  %s533_s20 = sphi %s573_s20, %s690_s20   ;;  %s529_s19 = sphi %s571_s19, %s689_s19   ;;  %s525_s18 = sphi %s569_s18, %s688_s18  }
   0x4   : > { %s594_s24 = sadd.s32 1, %s537_s21   ;;  %s135_s25 = sadd.s32 1, %s533_s20 }
   0x5   : > { %s132_s26 = ssub.s32 %s537_s21, %s594_s24  ;;  %p145_p0 = scmp.ne.s32.totalorder %s533_s20, %s529_s19 }
   0x6   : > { %p133_p1 = scmp.eq.s32.totalorder %s132_s26, 0  ;;  %p146_p2 = scmp.eq.s32.totalorder %s590_s22, 1 }
   0x7   : > { %p151_p3 = scmp.ne.s32.totalorder %s529_s19, %s525_s18  ;;  %p152_p4 = scmp.eq.s32.totalorder %s392_s23, 1 }
   0x8   : > { %s605_s27 = scalar_select %p133_p1, %s533_s20, %s135_s25  }
   0x9   : > { %p607_p5 = por %p146_p2, %p145_p0  ;;  %p611_p6 = por %p152_p4, %p151_p3 }
   0xa   : > { %p395_p7 = scmp.ge.s32.totalorder %s537_s21, 1  ;;  %p189_p8 = scmp.lt.s32.totalorder %s537_s21, 3 }
   0xc   : > { %p190_p9 = pnand %p395_p7, %p189_p8 }
   0xd   : > { %p216_p10 = scmp.lt.s32.totalorder (!%p190_p9), %s590_s22, 1  ;;  %s213_s8 = sand.u32 (!%p190_p9), 1, %s529_s19  }
   0xe   : > { %193 = sbr.rel (%p190_p9) target bundleno = 293 (0x125), region = 40  ;;  %s396_s9 = sshll.u32 (!%p190_p9), %s213_s8, 3 }
   0xf   : > { %s425_s10 = sshll.u32 (!%p190_p9), %s590_s22, 3  ;;  %s215_s16 = scalar_lea.vmem (!%p190_p9), [#allocation2], %s396_s9 }
  0x10   : > { %s328_s15 = scalar_lea.hbm (!%p190_p9), %s685_s5, %s425_s10  ;;  %s495_s7 = scalar_lea.hbm (!%p190_p9), %s685_s5, 16 }
  0x11   : > { %s332_s23 = sshll.u32 (!%p190_p9), %s328_s15, 4  ;;  %s333_s23 = int_to_ptr.hbm [resolvable:$true] %s332_s23 }
  0x12   : > { %s489_s25 = sshra.s32 (!%p190_p9), %s333_s23, 4  ;;  %s490_s25 = int_to_ptr.hbm [resolvable:$true] %s489_s25 }
  0x13   : > { %v429_v0 = vld [vmem:[%s681_s1 + $0x8] sm:$0xff]  ;;  %v433_v1 = vld [vmem:[%s683_s3 + $0x18] sm:$0xff]  ;;  %v428_v2 = vld [vmem:[%s681_s1] sm:$0xff]  ;;  %s217_s11 = scalar_select %p216_p10, %s590_s22, 1  ;;  %vm243_vm0 = vcmask 261120   ;;  %vm298_vm1 = vcmask 523264  }
  0x14   : > { %253 = vmatpush.bf16.msra.mxu0 %v429_v0  ;;  %306 = vmatpush.bf16.msra.mxu1 %v433_v1  ;;  %v432_v3 = vld [vmem:[%s683_s3 + $0x10] sm:$0xff]  ;;  %v431_v6 = vld [vmem:[%s683_s3 + $0x8] sm:$0xff]  ;;  %v430_v7 = vld [vmem:[%s683_s3] sm:$0xff]  ;;  %s318_s22 = scalar_lea.sflag [#allocation3], %s213_s8  ;;  %s491_s26 = scalar_lea.hbm %s490_s25, 8 }
  0x15   : > { %s397_s14 = sshll.u32 %s217_s11, 3  ;;  %v473_v8 = vld [vmem:[%s682_s2] ss:$0 sm:$0xff]  ;;  %p492_p11 = scmp.ne.s32.totalorder %s490_s25, %s491_s26 }
  0x16   : > { %s219_s17 = scalar_lea.vmem %s680_s0, %s397_s14  ;;  %v474_v14 = vld [vmem:[%s684_s4] ss:$0 sm:$0xff]  ;;  %p496_p0 = scmp.lt.s32.totalorder %s490_s25, %s685_s5 }
  0x17   : > { %v221_v4 = vld [vmem:[%s219_s17] sm:$0xff]  ;;  %s330_s17 = sshll.u32 %s215_s16, 4  ;;  %p493_p12 = pnand %p492_p11, %p607_p5  ;;  %s331_s17 = int_to_ptr.vmem [resolvable:$true] %s330_s17 }
  0x18   : > { %254 = vmatpush.bf16.msra.mxu0 %v428_v2  ;;  %307 = vmatpush.bf16.msra.mxu1 %v432_v3  ;;  %v222_v5 = vpack.c.bf16 %v221_v4, %v221_v4  ;;  %p497_p1 = scmp.lt.s32.totalorder %s495_s7, %s491_s26 }
  0x19   : > { %p494_p13 = pneg %p493_p12 }
  0x1a   : > { %p498_p2 = por %p497_p1, %p496_p0 }
  0x1b   : > { %406 = vmatmul.msk.bf16.vlgmr.msra.gmra.mxu0 %vm243_vm0, %v222_v5 }
  0x1c   : > { %308 = vmatpush.bf16.msra.mxu1 %v431_v6  ;;  %p499_p3 = pnand %p498_p2, %p494_p13 }
  0x20   : > { %309 = vmatpush.bf16.msra.mxu1 %v430_v7 }
  0x98   : > { %v256_v9 = vpop.f32.mrf.mxu0 }
  0x99   : > { %v257_v10 = vadd.f32 %v473_v8, %v256_v9 }
  0x9b   : > { %v260_v11 = vmax.f32 %v257_v10, 0.0 }
  0x9d   : > { %v261_v12 = vpack.c.bf16 %v260_v11, %v260_v11 }
  0x9f   : > { %423 = vmatmul.msk.bf16.vlgmr.msra.gmra.mxu1 %vm298_vm1, %v261_v12 }
  0xa0   : > { %v258_v13 = vpop.f32.mrf.mxu0 }
 0x11c   : > { %v311_v15 = vpop.f32.mrf.mxu1 }
 0x11d   : > { %v312_v16 = vadd.f32 %v474_v14, %v311_v15 }
 0x11f   : > { %v315_v17 = vadd.f32 %v312_v16, %v221_v4 }
 0x121   : > { %316 = vst.msk [vmem:[%s215_s16] sm:$0xff] %vm243_vm0, %v315_v17 }
 0x122   : > { %502 = shalt.err (!%p499_p3)
}
 0x123   : > { %434 = dma.vmem_to_hbm [thread:$0]  (%p607_p5), %s331_s17, 128, %s333_s23, %s318_s22  }
 0x124   : > { %v313_v18 = vpop.f32.mrf.mxu1 }
 0x125 PF: > { %p440_p4 = scmp.ge.s32.totalorder %s537_s21, 2  ;;  %s344_s8 = sand.u32 1, %s525_s18  }
 0x126   : > { %s345_s11 = scalar_lea.sflag [#allocation3], %s344_s8 }
 0x127   : > { %p437_p7 = pnand %p440_p4, %p611_p6 }
 0x129   : > { %p438_p8 = pneg %p437_p7 }
 0x12b   : > { %520 = dma.done.wait (%p438_p8), %s345_s11, 128  }
 0x12c   : > { %522 = vsyncadd (%p438_p8), %s345_s11, 4294967168  ;;  %p15_p9 = scmp.ge.s32.totalorder %s594_s24, 4   ;;  %s688_s18 = smov %s529_s19 }
 0x12d   : > { %s689_s19 = smov %s533_s20  ;;  %s690_s20 = smov %s605_s27 }
 0x12e   : > { %s691_s21 = smov %s594_s24  ;;  %17 = sbr.rel (!%p15_p9) target bundleno = 3 (0x3), region = 75 }
 0x133   :  { %351 = vsyncpa [#allocation3], 1 }
 0x134   :  { %353 = vsyncpa [#allocation3 + $0x1], 1 }

</bundles_post_ra>
